<compile_context>
chip_gen: v6e
topology: v6e:2x2x1
jax: 0.10.0
libtpu: 0.0.40
codegen_flags: <defaults>
</compile_context>

<pallas_src>
import functools

import jax
import jax.numpy as jnp
from jax.experimental import pallas as pl
from jax.experimental.pallas import tpu as pltpu


def _sqr_hinge_kernel(pred_ref, out_ref, acc_ref, *, rows_total, tile_rows,
                      acc_rows):
    """One (core, row-tile) step of the squared-hinge partial reduction."""
    p = pl.program_id(0)                      # core-partial index
    i = pl.program_id(1)                      # row-tile index within this core
    n_inner = pl.num_programs(1)

    @pl.when(i == 0)
    def _init():
        acc_ref[...] = jnp.zeros_like(acc_ref)

    # Logical (unclamped) tile index -> number of valid rows left in it.
    tile_idx = p * n_inner + i
    rows_valid = rows_total - tile_idx * tile_rows   # <= 0 for duplicate tiles

    pred = pred_ref[...].astype(jnp.float32)         # [TILE_R, W], cast in-kernel
    h = jnp.maximum(1.0 + pred, 0.0)                 # "-1" one-hot main term
    hsq = h * h

    def _fold(x):
        # Layout-preserving fold of the tile onto the small accumulator:
        # (TILE_R, W) -> (TILE_R/ACC_R, ACC_R, W) -> sum over leading axis.
        if tile_rows == acc_rows:
            return x
        return x.reshape(tile_rows // acc_rows, acc_rows, -1).sum(axis=0)

    # Hot path: full, in-range tiles accumulate with no mask at all.
    @pl.when(rows_valid >= tile_rows)
    def _full():
        acc_ref[...] += _fold(hsq)

    # Cold path: ragged last tile, or fully out-of-range clamped duplicate
    # tiles from the core split (rows_valid <= 0 -> mask is all-False).
    @pl.when(rows_valid < tile_rows)
    def _ragged():
        rows = jax.lax.broadcasted_iota(jnp.int32, hsq.shape, 0)
        acc_ref[...] += _fold(jnp.where(rows < rows_valid, hsq, 0.0))

    # Single small cross-lane reduce per core, after all its tiles are done.
    # Write a full lane-dense (1, 128) row (unmasked store).
    @pl.when(i == n_inner - 1)
    def _finalize():
        total = jnp.sum(acc_ref[...])
        out_ref[...] = jnp.full(out_ref.shape, total, dtype=jnp.float32)


def _pick_group(B, C):
    """Pick G dividing B for the lane-dense [B/G, G*C] view.

    Prefer the smallest G with (G*C) % 128 == 0 (fully lane-dense, unmasked
    vector loads); otherwise the largest G with G*C <= 1024."""
    for g in range(1, B + 1):
        if g * C > 4096:
            break
        if B % g:
            continue
        if (g * C) % 128 == 0:
            return g
    if C >= 128:
        return 1
    best = 1
    for g in range(1, B + 1):
        if g * C > 1024:
            break
        if B % g == 0:
            best = g
    return best


def _pick_tile_rows(rows, width, sub_mult):
    """Row tile targeting ~2M elements (≈8 MiB f32-equivalent of compute),
    rounded to the dtype's sublane multiple.  Double-buffered inputs plus the
    shrunken accumulator stay comfortably under the 32 MiB scoped-VMEM limit
    on v5e / v6e / v7x."""
    target_elems = 2 * 1024 * 1024
    budget = max(sub_mult, (target_elems // width) // sub_mult * sub_mult)
    return rows if rows <= budget else budget


def _num_tensorcores():
    """Best-effort TensorCore-per-chip detection (1 on v5e/v6e, 2 on v7x).
    Defaults to 1 — which is the right answer on single-TC chips."""
    try:
        info = pltpu.get_tpu_info()
        for attr in ("num_cores", "num_tensorcores", "tensorcores_per_chip",
                     "cores_per_chip", "core_count"):
            v = getattr(info, attr, None)
            if v:
                return max(1, int(v))
    except Exception:
        pass
    try:
        return max(1, int(getattr(jax.devices()[0], "num_cores", 1)))
    except Exception:
        return 1


def sqr_hinge_loss(predictions: jax.Array, targets: jax.Array) -> jax.Array:
    """predictions: [B, C] float, targets: [B] int class indices -> scalar f32."""
    B, C = predictions.shape
    n = B * C
    targets = targets.astype(jnp.int32)

    # Lane-dense grouped view (free reshape of the contiguous row-major array).
    G = _pick_group(B, C)
    R, W = B // G, G * C
    pred_view = predictions.reshape(R, W)

    itemsize = predictions.dtype.itemsize
    sub_mult = max(8, 32 // max(1, itemsize))        # 8 f32, 16 bf16, 32 int8
    TILE_R = _pick_tile_rows(R, W, sub_mult)
    ACC_R = 8 if TILE_R % 8 == 0 else TILE_R         # small sublane-tile accumulator

    total_tiles = pl.cdiv(R, TILE_R)
    P = max(1, min(_num_tensorcores(), total_tiles)) # per-core partials
    inner = pl.cdiv(total_tiles, P)

    def pred_block(p, i):
        # Clamp so the DMA never indexes past the array; fully out-of-range
        # duplicate tiles contribute zero via the in-kernel ragged branch.
        return (jnp.minimum(p * inner + i, total_tiles - 1), 0)

    kernel = functools.partial(_sqr_hinge_kernel, rows_total=R,
                               tile_rows=TILE_R, acc_rows=ACC_R)

    partials = pl.pallas_call(
        kernel,
        out_shape=jax.ShapeDtypeStruct((P, 128), jnp.float32),
        grid=(P, inner),
        in_specs=[pl.BlockSpec((TILE_R, W), pred_block)],   # native dtype
        out_specs=pl.BlockSpec((1, 128), lambda p, i: (p, 0)),
        scratch_shapes=[pltpu.VMEM((ACC_R, W), jnp.float32)],
        compiler_params=pltpu.CompilerParams(
            dimension_semantics=("parallel", "arbitrary"),
            vmem_limit_bytes=32 * 1024 * 1024,
        ),
    )(pred_view)

    # O(B) target-logit correction, done in XLA right next to the gather.
    pt = jnp.take_along_axis(predictions, targets[:, None], axis=1)
    pt = pt.astype(jnp.float32)                       # [B, 1]
    hp = jnp.maximum(1.0 - pt, 0.0)
    hm = jnp.maximum(1.0 + pt, 0.0)
    corr = jnp.sum(hp * hp - hm * hm)

    # Each per-core partial row holds its scalar broadcast across 128 lanes.
    return (jnp.sum(partials[:, 0]) + corr) / jnp.float32(n)


def _reference(predictions, targets):
    B, C = predictions.shape
    onehot = jnp.full((B, C), -1.0, dtype=jnp.float32)
    onehot = onehot.at[jnp.arange(B), targets].set(1.0)
    hinge = jnp.maximum(1.0 - predictions.astype(jnp.float32) * onehot, 0.0)
    return jnp.mean(hinge * hinge)


# TODO(synk): only the forward loss is implemented; the custom autograd
# backward() of SquaredHingeLoss is out of scope for this kernel.

if __name__ == "__main__":
    key = jax.random.PRNGKey(0)
    k1, k2 = jax.random.split(key)

    B, C = 8, 16  # small classification-style shapes
    predictions = jax.random.normal(k1, (B, C), dtype=jnp.float32)
    targets = jax.random.randint(k2, (B,), 0, C, dtype=jnp.int32)

    loss = sqr_hinge_loss(predictions, targets)
    jax.block_until_ready(loss)

    ref = _reference(predictions, targets)
    assert jnp.allclose(loss, ref, rtol=1e-5, atol=1e-6), (loss, ref)

    print("KERNEL_OK")
</pallas_src>

<mosaic_0001>
module attributes {stable_mosaic.version = 11 : i64} {
  func.func @_sqr_hinge_kernel(%arg0: i32, %arg1: i32, %arg2: memref<1x128xf32, #tpu.memory_space<vmem>>, %arg3: memref<1x128xf32, #tpu.memory_space<vmem>>, %arg4: memref<1x128xf32, #tpu.memory_space<vmem>>) attributes {dimension_semantics = [#tpu.dimension_semantics<parallel>, #tpu.dimension_semantics<arbitrary>], iteration_bounds = array<i64: 1, 1>, scalar_prefetch = 0 : i64, scratch_operands = 1 : i64, tpu.core_type = #tpu.core_type<tc>, window_params = [{transform_indices = @transform_0, window_bounds = array<i64: 1, 128>}, {transform_indices = @transform_1, window_bounds = array<i64: 1, 128>}]} {
    %c0_i32 = arith.constant 0 : i32
    %0 = arith.cmpi eq, %arg1, %c0_i32 : i32
    %1 = arith.extui %0 : i1 to i32
    %c0_i32_0 = arith.constant 0 : i32
    %2 = arith.cmpi ne, %1, %c0_i32_0 : i32
    scf.if %2 {
      %cst_11 = arith.constant 0.000000e+00 : f32
      %22 = vector.broadcast %cst_11 : f32 to vector<1x128xf32>
      %c0_12 = arith.constant 0 : index
      %c0_13 = arith.constant 0 : index
      %23 = vector.load %arg4[%c0_12, %c0_13] : memref<1x128xf32, #tpu.memory_space<vmem>>, vector<1x128xf32>
      tpu.vector_store %arg4[%c0_12, %c0_13], %22 {strides = array<i32>} : memref<1x128xf32, #tpu.memory_space<vmem>>, vector<1x128xf32>,
    } else {
    }
    %c1_i32 = arith.constant 1 : i32
    %3 = arith.muli %arg0, %c1_i32 : i32
    %4 = arith.addi %3, %arg1 : i32
    %c1_i32_1 = arith.constant 1 : i32
    %5 = arith.muli %4, %c1_i32_1 : i32
    %c1_i32_2 = arith.constant 1 : i32
    %6 = arith.subi %c1_i32_2, %5 : i32
    %c0 = arith.constant 0 : index
    %c0_3 = arith.constant 0 : index
    %7 = vector.load %arg2[%c0, %c0_3] : memref<1x128xf32, #tpu.memory_space<vmem>>, vector<1x128xf32>
    %cst = arith.constant 1.000000e+00 : f32
    %8 = vector.broadcast %cst : f32 to vector<1x128xf32>
    %9 = arith.addf %8, %7 : vector<1x128xf32>
    %cst_4 = arith.constant 0.000000e+00 : f32
    %10 = vector.broadcast %cst_4 : f32 to vector<1x128xf32>
    %11 = arith.maximumf %9, %10 : vector<1x128xf32>
    %12 = arith.mulf %11, %11 : vector<1x128xf32>
    %c1_i32_5 = arith.constant 1 : i32
    %13 = arith.cmpi sge, %6, %c1_i32_5 : i32
    %14 = arith.extui %13 : i1 to i32
    %c0_i32_6 = arith.constant 0 : i32
    %15 = arith.cmpi ne, %14, %c0_i32_6 : i32
    scf.if %15 {
      %c0_11 = arith.constant 0 : index
      %c0_12 = arith.constant 0 : index
      %22 = vector.load %arg4[%c0_11, %c0_12] : memref<1x128xf32, #tpu.memory_space<vmem>>, vector<1x128xf32>
      %23 = arith.addf %22, %12 : vector<1x128xf32>
      %c0_13 = arith.constant 0 : index
      %c0_14 = arith.constant 0 : index
      %24 = vector.load %arg4[%c0_13, %c0_14] : memref<1x128xf32, #tpu.memory_space<vmem>>, vector<1x128xf32>
      tpu.vector_store %arg4[%c0_13, %c0_14], %23 {strides = array<i32>} : memref<1x128xf32, #tpu.memory_space<vmem>>, vector<1x128xf32>,
    } else {
    }
    %c1_i32_7 = arith.constant 1 : i32
    %16 = arith.cmpi slt, %6, %c1_i32_7 : i32
    %17 = arith.extui %16 : i1 to i32
    %c0_i32_8 = arith.constant 0 : i32
    %18 = arith.cmpi ne, %17, %c0_i32_8 : i32
    scf.if %18 {
      %22 = tpu.iota {dimensions = array<i32: 0>} : vector<1x128xi32>
      %c0_11 = arith.constant 0 : index
      %c0_12 = arith.constant 0 : index
      %23 = vector.load %arg4[%c0_11, %c0_12] : memref<1x128xf32, #tpu.memory_space<vmem>>, vector<1x128xf32>
      %24 = vector.broadcast %6 : i32 to vector<1x128xi32>
      %25 = arith.cmpi slt, %22, %24 : vector<1x128xi32>
      %cst_13 = arith.constant 0.000000e+00 : f32
      %26 = vector.broadcast %cst_13 : f32 to vector<1x128xf32>
      %27 = arith.select %25, %12, %26 : vector<1x128xi1>, vector<1x128xf32>
      %28 = arith.addf %23, %27 : vector<1x128xf32>
      %c0_14 = arith.constant 0 : index
      %c0_15 = arith.constant 0 : index
      %29 = vector.load %arg4[%c0_14, %c0_15] : memref<1x128xf32, #tpu.memory_space<vmem>>, vector<1x128xf32>
      tpu.vector_store %arg4[%c0_14, %c0_15], %28 {strides = array<i32>} : memref<1x128xf32, #tpu.memory_space<vmem>>, vector<1x128xf32>,
    } else {
    }
    %c0_i32_9 = arith.constant 0 : i32
    %19 = arith.cmpi eq, %arg1, %c0_i32_9 : i32
    %20 = arith.extui %19 : i1 to i32
    %c0_i32_10 = arith.constant 0 : i32
    %21 = arith.cmpi ne, %20, %c0_i32_10 : i32
    scf.if %21 {
      %c0_11 = arith.constant 0 : index
      %c0_12 = arith.constant 0 : index
      %22 = vector.load %arg4[%c0_11, %c0_12] : memref<1x128xf32, #tpu.memory_space<vmem>>, vector<1x128xf32>
      %23 = vector.shape_cast %22 : vector<1x128xf32> to vector<1x1x128xf32>
      %cst_13 = arith.constant dense<0.000000e+00> : vector<1xf32>
      %24 = vector.multi_reduction <add>, %23, %cst_13 [1, 2] : vector<1x1x128xf32> to vector<1xf32>
      %25 = vector.shape_cast %24 : vector<1xf32> to vector<1x1x1xf32>
      %26 = vector.extract %25[0, 0, 0] : f32 from vector<1x1x1xf32>
      %27 = vector.broadcast %26 : f32 to vector<1x128xf32>
      %c0_14 = arith.constant 0 : index
      %c0_15 = arith.constant 0 : index
      %28 = vector.load %arg3[%c0_14, %c0_15] : memref<1x128xf32, #tpu.memory_space<vmem>>, vector<1x128xf32>
      tpu.vector_store %arg3[%c0_14, %c0_15], %27 {strides = array<i32>} : memref<1x128xf32, #tpu.memory_space<vmem>>, vector<1x128xf32>,
    } else {
    }
    return
  }
  func.func @transform_0(%arg0: i32, %arg1: i32) -> (i32, i32) {
    %c1_i32 = arith.constant 1 : i32
    %0 = arith.muli %arg0, %c1_i32 : i32
    %1 = arith.addi %0, %arg1 : i32
    %c0_i32 = arith.constant 0 : i32
    %2 = arith.minsi %1, %c0_i32 : i32
    %c0_i32_0 = arith.constant 0 : i32
    %c0_i32_1 = arith.constant 0 : i32
    return %2, %c0_i32_0 : i32, i32
  }
  func.func @transform_1(%arg0: i32, %arg1: i32) -> (i32, i32) {
    %c0_i32 = arith.constant 0 : i32
    %c0_i32_0 = arith.constant 0 : i32
    return %arg0, %c0_i32 : i32, i32
  }
}

</mosaic_0001>

<bundles_post_ra>
// kernel: tpu_custom_call.1
= control target key start
LH: loop header
LB: loop body
LE: loop exit
PB: predicated region body
PF: predicated region fallthrough
CT: control target
= control target key end

     0   :  { %6 = vsyncpa [#allocation4], 0  ;;  %s161_s0 = inlined_call_operand.hbm [shape: f32[1,128], index: 0, kind: input, shape index: {}]   ;;  %s162_s1 = inlined_call_operand.hbm [shape: f32[1,128], index: 1, kind: output, shape index: {}]  }
   0x1   :  { %7 = vsyncpa [#allocation5], 0  ;;  %s142_s6 = smov [#allocation3]  }
   0x2   :  { %s19_s7 = sshll.u32 %s142_s6, 4  ;;  %s20_s7 = int_to_ptr.vmem [resolvable:$true] %s19_s7 }
   0x3   :  { %s106_s8 = scalar_lea.vmem %s20_s7, 16  ;;  %s110_s9 = scalar_lea.vmem %s20_s7, 32 }
   0x4   :  { %p107_p0 = scmp.ne.s32.totalorder %s20_s7, %s106_s8  ;;  %p111_p1 = scmp.lt.s32.totalorder %s20_s7, %s20_s7 }
   0x5   :  { %p112_p2 = scmp.lt.s32.totalorder %s110_s9, %s106_s8 }
   0x7   :  { %p113_p3 = por %p112_p2, %p111_p1 }
   0x9   :  { %p114_p4 = pnand %p113_p3, %p107_p0 }
   0xb   :  { %117 = shalt.err (!%p114_p4)
}
   0xc   :  { %22 = dma.hbm_to_vmem [thread:$0]  %s161_s0, 16, %s20_s7, [#allocation4]  }
   0xd   :  { %138 = dma.done.wait [#allocation4], 16  }
   0xe   :  { %139 = vsyncadd [#allocation4], 4294967280  ;;  %v143_v0 = vmov 0.0   ;;  %v36_v1 = vld [vmem:[#allocation3] sm:$0x1]  ;;  %vm63_vm0 = vcmask 1040384  }
   0xf   :  { %33 = vst [vmem:[#allocation2] sm:$0x1] %v143_v0  ;;  %v37_v2 = vadd.f32 1.0, %v36_v1  ;;  %s144_s0 = smov [#allocation6]  }
  0x10   :  { %s82_s12 = sshll.u32 %s144_s0, 4  ;;  %s83_s12 = int_to_ptr.vmem [resolvable:$true] %s82_s12 }
  0x11   :  { %v38_v3 = vmax.f32 %v37_v2, 0.0  ;;  %s118_s14 = scalar_lea.vmem %s83_s12, 16  ;;  %s122_s15 = scalar_lea.vmem %s83_s12, 32 }
  0x12   :  { %p119_p5 = scmp.ne.s32.totalorder %s83_s12, %s118_s14  ;;  %p123_p6 = scmp.lt.s32.totalorder %s83_s12, %s83_s12 }
  0x13   :  { %v39_v5 = vmul.f32 %v38_v3, %v38_v3  ;;  %p124_p7 = scmp.lt.s32.totalorder %s122_s15, %s118_s14 }
  0x15   :  { %p125_p8 = por %p124_p7, %p123_p6 }
  0x16   :  { %v44_v4 = vld [vmem:[#allocation2] sm:$0x1] }
  0x17   :  { %v45_v6 = vadd.f32 %v44_v4, %v39_v5  ;;  %p126_p9 = pnand %p125_p8, %p119_p5 }
  0x19   :  { %46 = vst [vmem:[#allocation2] sm:$0x1] %v45_v6 }
  0x20   :  { %v62_v7 = vld [vmem:[#allocation2] sm:$0x1] }
  0x21   :  { %v64_v8 = vsel %vm63_vm0, %v62_v7, 0.0 }
  0x22   :  { %65 = vadd.xlane.f32.xlu0 %v64_v8 }
  0xab   :  { %v66_v9 = vpop.xlane.xlu0 %65 }
  0xac   :  { %v67_v10 = vrot.slane %v66_v9, 4 }
  0xae   :  { %v68_v11 = vadd.f32 %v67_v10, %v66_v9 }
  0xb0   :  { %v69_v12 = vrot.slane %v68_v11, 2 }
  0xb2   :  { %v70_v13 = vadd.f32 %v69_v12, %v68_v11 }
  0xb4   :  { %v71_v14 = vrot.slane %v70_v13, 1 }
  0xb6   :  { %v72_v15 = vadd.f32 %v71_v14, %v70_v13 }
  0xb8   :  { %93 = vpush %v72_v15 }
  0xe9   :  { %s94_s13 = spop %93 }
  0xea   :  { %v74_v16 = vstv %s94_s13 }
  0xeb   :  { %75 = vst [vmem:[#allocation6] sm:$0x1] %v74_v16 }
  0xec   :  { %129 = shalt.err (!%p126_p9)
}
  0xed   :  { %85 = dma.vmem_to_hbm [thread:$0]  %s83_s12, 16, %s162_s1, [#allocation5]  }
  0xee   :  { %140 = dma.done.wait [#allocation5], 16  }
  0xef   :  { %141 = vsyncadd [#allocation5], 4294967280 }
  0xf0   :  { %89 = vsyncpa [#allocation4], 1 }
  0xf1   :  { %90 = vsyncpa [#allocation5], 1 }

</bundles_post_ra>
